<compile_context>
chip_gen: v5e
topology: v5e:2x2
jax: 0.10.0
libtpu: 0.0.40
codegen_flags: <defaults>
</compile_context>

<pallas_src>
import jax
import jax.numpy as jnp
from jax.experimental import pallas as pl
from jax.experimental.pallas import tpu as pltpu

HIDDEN = 128


def _round_up(x, m):
    return ((x + m - 1) // m) * m


def _choose_tile_b(batch, requested):
    """Pick a batch tile: big (amortizes ~0.35us/step), 16-aligned, low waste,
    and >= 2 grid steps for large batches (v7x megacore)."""
    b16 = _round_up(max(batch, 1), 16)
    tile = _round_up(min(requested, b16), 16)
    # Keep >= 2 grid steps when the batch is big enough, without shrinking
    # tiles below ~512 rows.
    half = _round_up((b16 + 1) // 2, 16)
    if half >= 512 and tile > half:
        tile = half
    return max(16, tile)


def _value_net_kernel(x_ref, w1_ref, b1_ref, w2_ref, b2_ref, w3_ref, b3_ref, o_ref):
    # Layer 1: MXU matmul in the input dtype (f32 or bf16), f32 accumulate,
    # bias + ReLU in f32 on the VPU.
    x = x_ref[...].astype(w1_ref.dtype)
    h1 = jnp.dot(x, w1_ref[...], preferred_element_type=jnp.float32) + b1_ref[...]
    h1 = jnp.maximum(h1, 0.0)

    # Layer 2: same scheme.
    h2 = jnp.dot(h1.astype(w2_ref.dtype), w2_ref[...],
                 preferred_element_type=jnp.float32) + b2_ref[...]
    h2 = jnp.maximum(h2, 0.0)

    # Layer 3 (value head, out_features = 1), kept fully in f32:
    #   (1, H) x (tile_b, H)^T -> (1, tile_b)   (lane-dense output row)
    v = jax.lax.dot_general(
        w3_ref[...], h2,
        dimension_numbers=(((1,), (1,)), ((), ())),
        preferred_element_type=jnp.float32,
    )
    v = v + b3_ref[0, 0]          # scalar bias from SMEM
    o_ref[...] = v.astype(o_ref.dtype)


def value_net_forward(state, params, *, tile_b=1024):
    """state: (B, state_dim). Returns (B, 1) float32."""
    w1, b1 = params["w1"], params["b1"]      # (state_dim, H), (1, H)
    w2, b2 = params["w2"], params["b2"]      # (H, H), (1, H)
    w3t, b3 = params["w3t"], params["b3"]    # (1, H) f32, (1, 1) f32

    B, state_dim = state.shape
    tile = _choose_tile_b(B, tile_b)
    b_pad = _round_up(B, tile)
    if b_pad != B:
        state = jnp.pad(state, ((0, b_pad - B), (0, 0)))
    num_tiles = b_pad // tile

    # Weights/biases: constant index_map -> VMEM-resident across all grid steps.
    def resident(a):
        return pl.BlockSpec(a.shape, lambda i: (0,) * a.ndim,
                            memory_space=pltpu.VMEM)

    out = pl.pallas_call(
        _value_net_kernel,
        out_shape=jax.ShapeDtypeStruct((num_tiles, tile), jnp.float32),
        grid=(num_tiles,),
        in_specs=[
            pl.BlockSpec((tile, state_dim), lambda i: (i, 0),
                         memory_space=pltpu.VMEM),
            resident(w1), resident(b1),
            resident(w2), resident(b2),
            resident(w3t),
            pl.BlockSpec(memory_space=pltpu.SMEM),   # (1, 1) head bias scalar
        ],
        out_specs=pl.BlockSpec((1, tile), lambda i: (i, 0),
                               memory_space=pltpu.VMEM),
        compiler_params=pltpu.CompilerParams(
            dimension_semantics=("parallel",)),
    )(state, w1, b1, w2, b2, w3t, b3)

    # (num_tiles, tile) in row-major order == batch order; drop padding -> (B, 1).
    return out.reshape(b_pad, 1)[:B]


def init_value_net_params(key, state_dim, hidden=HIDDEN, normal=1e-3,
                          weight_dtype=jnp.float32):
    """Params stored directly in kernel layout (no per-call preprocessing):
       W as (in, out) (transpose of PyTorch), b as (1, out), layer-3 weight as a
       (1, hidden) f32 row, layer-3 bias as (1, 1) f32.
    PyTorch Linear default init is U(-1/sqrt(fan_in), 1/sqrt(fan_in)); layer3 is
    re-initialized to U(-normal, normal) as in the module's __init__."""
    k1, k2, k3, k4, k5, k6 = jax.random.split(key, 6)
    lim1 = 1.0 / jnp.sqrt(jnp.float32(state_dim))
    lim2 = 1.0 / jnp.sqrt(jnp.float32(hidden))
    return {
        "w1": jax.random.uniform(k1, (state_dim, hidden), jnp.float32,
                                 -lim1, lim1).astype(weight_dtype),
        "b1": jax.random.uniform(k2, (1, hidden), jnp.float32, -lim1, lim1),
        "w2": jax.random.uniform(k3, (hidden, hidden), jnp.float32,
                                 -lim2, lim2).astype(weight_dtype),
        "b2": jax.random.uniform(k4, (1, hidden), jnp.float32, -lim2, lim2),
        "w3t": jax.random.uniform(k5, (1, hidden), jnp.float32, -normal, normal),
        "b3": jax.random.uniform(k6, (1, 1), jnp.float32, -normal, normal),
    }


def _reference_forward(state, params):
    x = state.astype(jnp.float32)
    h1 = jnp.maximum(x @ params["w1"].astype(jnp.float32) + params["b1"], 0.0)
    h2 = jnp.maximum(h1 @ params["w2"].astype(jnp.float32) + params["b2"], 0.0)
    return h2 @ params["w3t"].astype(jnp.float32).T + params["b3"]


if __name__ == "__main__":
    key = jax.random.PRNGKey(0)
    k_params, k_small, k_big = jax.random.split(key, 3)

    state_dim = 16
    params = init_value_net_params(k_params, state_dim)   # f32 weights

    forward = jax.jit(value_net_forward, static_argnames=("tile_b",))

    # Small shape consistent with the module (single tile, grid=(1,)), full f32.
    batch = 8
    state = jax.random.normal(k_small, (batch, state_dim), dtype=jnp.float32)
    value = jax.block_until_ready(forward(state, params))
    ref = _reference_forward(state, params)
    assert value.shape == (batch, 1)
    assert jnp.allclose(value, ref, atol=1e-4, rtol=1e-3)

    # Larger, non-multiple batch: exercises tiling, padding, lane-dense output
    # row reshape, and a multi-step "parallel" grid.
    batch_big = 2500
    state_big = jax.random.normal(k_big, (batch_big, state_dim), dtype=jnp.float32)
    value_big = jax.block_until_ready(forward(state_big, params, tile_b=1024))
    ref_big = _reference_forward(state_big, params)
    assert value_big.shape == (batch_big, 1)
    assert jnp.allclose(value_big, ref_big, atol=1e-4, rtol=1e-3)

    # bf16 input path: state and L1/L2 weights arrive in bf16 (halves the
    # dominant HBM read); accumulation and the value head remain f32.
    params_bf16 = init_value_net_params(k_params, state_dim,
                                        weight_dtype=jnp.bfloat16)
    state_bf16 = state_big.astype(jnp.bfloat16)
    value_bf16 = jax.block_until_ready(forward(state_bf16, params_bf16))
    ref_bf16 = _reference_forward(state_bf16, params_bf16)
    assert value_bf16.shape == (batch_big, 1)
    assert jnp.allclose(value_bf16, ref_bf16, atol=5e-3, rtol=5e-2)

    print("KERNEL_OK")
</pallas_src>

<mosaic_0001>
module attributes {stable_mosaic.version = 11 : i64} {
  func.func @_value_net_kernel(%arg0: i32, %arg1: memref<16x16xf32, #tpu.memory_space<vmem>>, %arg2: memref<16x128xf32, #tpu.memory_space<vmem>>, %arg3: memref<1x128xf32, #tpu.memory_space<vmem>>, %arg4: memref<128x128xf32, #tpu.memory_space<vmem>>, %arg5: memref<1x128xf32, #tpu.memory_space<vmem>>, %arg6: memref<1x128xf32, #tpu.memory_space<vmem>>, %arg7: memref<1x1xf32, #tpu.memory_space<smem>>, %arg8: memref<1x16xf32, #tpu.memory_space<vmem>>) attributes {dimension_semantics = [#tpu.dimension_semantics<parallel>], iteration_bounds = array<i64: 1>, scalar_prefetch = 0 : i64, scratch_operands = 0 : i64, tpu.core_type = #tpu.core_type<tc>, window_params = [{transform_indices = @transform_0, window_bounds = array<i64: 16, 16>}, {pipeline_mode = #tpu.pipeline_mode<synchronous>, transform_indices = @transform_1, window_bounds = array<i64: 16, 128>}, {pipeline_mode = #tpu.pipeline_mode<synchronous>, transform_indices = @transform_2, window_bounds = array<i64: 1, 128>}, {pipeline_mode = #tpu.pipeline_mode<synchronous>, transform_indices = @transform_3, window_bounds = array<i64: 128, 128>}, {pipeline_mode = #tpu.pipeline_mode<synchronous>, transform_indices = @transform_4, window_bounds = array<i64: 1, 128>}, {pipeline_mode = #tpu.pipeline_mode<synchronous>, transform_indices = @transform_5, window_bounds = array<i64: 1, 128>}, {transform_indices = @transform_6, window_bounds = array<i64: 1, 1>}, {transform_indices = @transform_7, window_bounds = array<i64: 1, 16>}]} {
    %c0 = arith.constant 0 : index
    %c0_0 = arith.constant 0 : index
    %0 = vector.load %arg1[%c0, %c0_0] : memref<16x16xf32, #tpu.memory_space<vmem>>, vector<16x16xf32>
    %c0_1 = arith.constant 0 : index
    %c0_2 = arith.constant 0 : index
    %1 = vector.load %arg2[%c0_1, %c0_2] : memref<16x128xf32, #tpu.memory_space<vmem>>, vector<16x128xf32>
    %cst = arith.constant dense<0.000000e+00> : vector<16x128xf32>
    %2 = tpu.matmul %0, %1, %cst {dimension_numbers = #tpu.dot_dimension_numbers<[1], [0], [0], [1], [0, 0, 1, 1], [], []>} : vector<16x16xf32>, vector<16x128xf32>, vector<16x128xf32> -> vector<16x128xf32>
    %c0_3 = arith.constant 0 : index
    %c0_4 = arith.constant 0 : index
    %3 = vector.load %arg3[%c0_3, %c0_4] : memref<1x128xf32, #tpu.memory_space<vmem>>, vector<1x128xf32>
    %4 = vector.broadcast %3 : vector<1x128xf32> to vector<16x128xf32>
    %5 = arith.addf %2, %4 : vector<16x128xf32>
    %cst_5 = arith.constant 0.000000e+00 : f32
    %6 = vector.broadcast %cst_5 : f32 to vector<16x128xf32>
    %7 = arith.maximumf %5, %6 : vector<16x128xf32>
    %c0_6 = arith.constant 0 : index
    %c0_7 = arith.constant 0 : index
    %8 = vector.load %arg4[%c0_6, %c0_7] : memref<128x128xf32, #tpu.memory_space<vmem>>, vector<128x128xf32>
    %cst_8 = arith.constant dense<0.000000e+00> : vector<16x128xf32>
    %9 = tpu.matmul %7, %8, %cst_8 {dimension_numbers = #tpu.dot_dimension_numbers<[1], [0], [0], [1], [0, 0, 1, 1], [], []>} : vector<16x128xf32>, vector<128x128xf32>, vector<16x128xf32> -> vector<16x128xf32>
    %c0_9 = arith.constant 0 : index
    %c0_10 = arith.constant 0 : index
    %10 = vector.load %arg5[%c0_9, %c0_10] : memref<1x128xf32, #tpu.memory_space<vmem>>, vector<1x128xf32>
    %11 = vector.broadcast %10 : vector<1x128xf32> to vector<16x128xf32>
    %12 = arith.addf %9, %11 : vector<16x128xf32>
    %cst_11 = arith.constant 0.000000e+00 : f32
    %13 = vector.broadcast %cst_11 : f32 to vector<16x128xf32>
    %14 = arith.maximumf %12, %13 : vector<16x128xf32>
    %c0_12 = arith.constant 0 : index
    %c0_13 = arith.constant 0 : index
    %15 = vector.load %arg6[%c0_12, %c0_13] : memref<1x128xf32, #tpu.memory_space<vmem>>, vector<1x128xf32>
    %cst_14 = arith.constant dense<0.000000e+00> : vector<1x16xf32>
    %16 = tpu.matmul %15, %14, %cst_14 {dimension_numbers = #tpu.dot_dimension_numbers<[1], [1], [0], [0], [0, 0, 1, 0], [], []>} : vector<1x128xf32>, vector<16x128xf32>, vector<1x16xf32> -> vector<1x16xf32>
    %c0_15 = arith.constant 0 : index
    %c0_16 = arith.constant 0 : index
    %17 = memref.load %arg7[%c0_15, %c0_16] : memref<1x1xf32, #tpu.memory_space<smem>>
    %18 = vector.broadcast %17 : f32 to vector<1x16xf32>
    %19 = arith.addf %16, %18 : vector<1x16xf32>
    %c0_17 = arith.constant 0 : index
    %c0_18 = arith.constant 0 : index
    %20 = vector.load %arg8[%c0_17, %c0_18] : memref<1x16xf32, #tpu.memory_space<vmem>>, vector<1x16xf32>
    tpu.vector_store %arg8[%c0_17, %c0_18], %19 {strides = array<i32>} : memref<1x16xf32, #tpu.memory_space<vmem>>, vector<1x16xf32>,
    return
  }
  func.func @transform_0(%arg0: i32) -> (i32, i32) {
    %c0_i32 = arith.constant 0 : i32
    %c0_i32_0 = arith.constant 0 : i32
    return %arg0, %c0_i32 : i32, i32
  }
  func.func @transform_1(%arg0: i32) -> (i32, i32) {
    %c0_i32 = arith.constant 0 : i32
    %c0_i32_0 = arith.constant 0 : i32
    %c0_i32_1 = arith.constant 0 : i32
    return %c0_i32, %c0_i32_0 : i32, i32
  }
  func.func @transform_2(%arg0: i32) -> (i32, i32) {
    %c0_i32 = arith.constant 0 : i32
    %c0_i32_0 = arith.constant 0 : i32
    %c0_i32_1 = arith.constant 0 : i32
    return %c0_i32, %c0_i32_0 : i32, i32
  }
  func.func @transform_3(%arg0: i32) -> (i32, i32) {
    %c0_i32 = arith.constant 0 : i32
    %c0_i32_0 = arith.constant 0 : i32
    %c0_i32_1 = arith.constant 0 : i32
    return %c0_i32, %c0_i32_0 : i32, i32
  }
  func.func @transform_4(%arg0: i32) -> (i32, i32) {
    %c0_i32 = arith.constant 0 : i32
    %c0_i32_0 = arith.constant 0 : i32
    %c0_i32_1 = arith.constant 0 : i32
    return %c0_i32, %c0_i32_0 : i32, i32
  }
  func.func @transform_5(%arg0: i32) -> (i32, i32) {
    %c0_i32 = arith.constant 0 : i32
    %c0_i32_0 = arith.constant 0 : i32
    %c0_i32_1 = arith.constant 0 : i32
    return %c0_i32, %c0_i32_0 : i32, i32
  }
  func.func @transform_6(%arg0: i32) -> (i32, i32) {
    %c0_i32 = arith.constant 0 : i32
    %c0_i32_0 = arith.constant 0 : i32
    %c0_i32_1 = arith.constant 0 : i32
    return %c0_i32, %c0_i32_0 : i32, i32
  }
  func.func @transform_7(%arg0: i32) -> (i32, i32) {
    %c0_i32 = arith.constant 0 : i32
    %c0_i32_0 = arith.constant 0 : i32
    return %arg0, %c0_i32 : i32, i32
  }
}

</mosaic_0001>

<bundles_post_ra>
// kernel: value_net_forward.1
= control target key start
LH: loop header
LB: loop body
LE: loop exit
PB: predicated region body
PF: predicated region fallthrough
CT: control target
= control target key end

     0   :  { %13 = vsyncpa [#allocation4], 0  ;;  %s207_s27 = smov [#allocation3]   ;;  %s208_s29 = smov 128   ;;  %s282_s0 = inlined_call_operand.vmem [shape: f32[16,16], index: 0, kind: input, shape index: {}]   ;;  %s283_s1 = inlined_call_operand.vmem [shape: f32[16,128], index: 1, kind: input, shape index: {}]   ;;  %s284_s2 = inlined_call_operand.vmem [shape: f32[1,128], index: 2, kind: input, shape index: {}]   ;;  %s285_s3 = inlined_call_operand.hbm [shape: f32[128,128], index: 3, kind: input, shape index: {}]   ;;  %s286_s4 = inlined_call_operand.vmem [shape: f32[1,128], index: 4, kind: input, shape index: {}]   ;;  %s287_s5 = inlined_call_operand.vmem [shape: f32[1,128], index: 5, kind: input, shape index: {}]   ;;  %s288_s6 = inlined_call_operand.<no memory space> [shape: f32[1,1], index: 6, kind: input, shape index: {}]   ;;  %s289_s7 = inlined_call_operand.vmem [shape: f32[1,16], index: 7, kind: output, shape index: {}]  }
   0x1   :  { %s24_s26 = sshll.u32 %s285_s3, 4  ;;  %s26_s28 = sshll.u32 %s207_s27, 4  ;;  %s25_s26 = int_to_ptr.hbm [resolvable:$true] %s24_s26  ;;  %s27_s28 = int_to_ptr.vmem [resolvable:$true] %s26_s28 }
   0x2   :  { %s209_s30 = smov 8  }
   0x3   :  { %32 = dma.hbm_to_vmem [thread:$0]  %s25_s26, 2048, %s27_s28, [#allocation4], %s208_s29, %s208_s29, %s209_s30  }
   0x4   :  { %205 = dma.done.wait [#allocation4], 2048  }
   0x5   :  { %206 = vsyncadd [#allocation4], 4294965248  ;;  %v46_v0 = vld [vmem:[%s283_s1 + $0x8] sm:$0xff]  ;;  %v45_v1 = vld [vmem:[%s283_s1] sm:$0xff]  ;;  %vm51_vm0 = vcmask 130048   ;;  %v130_v35 = vstv %s288_s6  ;;  %vm151_vm1 = vcmask 122880  }
   0x6   :  { %72 = vmatpush.msra.mxu0 %v46_v0  ;;  %v43_v2 = vld [vmem:[%s282_s0] sm:$0xff]  ;;  %v98_v3 = vld [vmem:[#allocation3 + $0x78] sm:$0xff]  ;;  %v97_v4 = vld [vmem:[#allocation3 + $0x70] sm:$0xff] }
   0x7   :  { %103 = vmatpush.msra.mxu1 %v98_v3  ;;  %160 = vmatpush.msra.mxu3 %v98_v3  ;;  %v96_v5 = vld [vmem:[#allocation3 + $0x68] sm:$0xff]  ;;  %v95_v6 = vld [vmem:[#allocation3 + $0x60] sm:$0xff]  ;;  %v94_v7 = vld [vmem:[#allocation3 + $0x58] sm:$0xff] }
   0x8   :  { %73 = vmatpush.msra.mxu0 %v45_v1  ;;  %v44_v8 = vld [vmem:[%s282_s0 + $0x8] sm:$0xff]  ;;  %v93_v9 = vld [vmem:[#allocation3 + $0x50] sm:$0xff]  ;;  %v91_v11 = vld [vmem:[#allocation3 + $0x40] sm:$0xff] }
   0x9   :  { %158 = vmatmul.msk.f32.vlgmr.msra.gmra.mxu0 %vm51_vm0, %v43_v2  ;;  %104 = vmatpush.msra.mxu1 %v97_v4  ;;  %v92_v10 = vld [vmem:[#allocation3 + $0x48] sm:$0xff]  ;;  %v90_v12 = vld [vmem:[#allocation3 + $0x38] sm:$0xff]  ;;  %v89_v13 = vld [vmem:[#allocation3 + $0x30] sm:$0xff] }
   0xa   :  { %161 = vmatpush.msra.mxu3 %v97_v4  ;;  %v88_v14 = vld [vmem:[#allocation3 + $0x28] sm:$0xff]  ;;  %v87_v15 = vld [vmem:[#allocation3 + $0x20] sm:$0xff]  ;;  %v86_v16 = vld [vmem:[#allocation3 + $0x18] sm:$0xff] }
   0xb   :  { %105 = vmatpush.msra.mxu1 %v96_v5  ;;  %v85_v17 = vld [vmem:[#allocation3 + $0x10] sm:$0xff]  ;;  %v84_v18 = vld [vmem:[#allocation3 + $0x8] sm:$0xff]  ;;  %v83_v19 = vld [vmem:[#allocation3] sm:$0xff] }
   0xc   :  { %162 = vmatpush.msra.mxu3 %v96_v5  ;;  %v179_v20 = vld [vmem:[%s284_s2] ss:$0 sm:$0xff] }
   0xd   :  { %106 = vmatpush.msra.mxu1 %v95_v6  ;;  %v180_v27 = vld [vmem:[%s286_s4] ss:$0 sm:$0xff] }
   0xe   :  { %163 = vmatpush.msra.mxu3 %v95_v6  ;;  %v128_v34 = vld [vmem:[%s287_s5] sm:$0x1] }
   0xf   :  { %107 = vmatpush.msra.mxu1 %v94_v7 }
  0x10   :  { %164 = vmatpush.msra.mxu3 %v94_v7 }
  0x11   :  { %159 = vmatmul.msk.f32.gmra.mxu0 %vm51_vm0, %v44_v8  ;;  %108 = vmatpush.msra.mxu1 %v93_v9 }
  0x12   :  { %165 = vmatpush.msra.mxu3 %v93_v9 }
  0x13   :  { %109 = vmatpush.msra.mxu1 %v92_v10 }
  0x14   :  { %166 = vmatpush.msra.mxu3 %v92_v10 }
  0x15   :  { %110 = vmatpush.msra.mxu1 %v91_v11 }
  0x16   :  { %167 = vmatpush.msra.mxu3 %v91_v11 }
  0x17   :  { %111 = vmatpush.msra.mxu1 %v90_v12 }
  0x18   :  { %168 = vmatpush.msra.mxu3 %v90_v12 }
  0x19   :  { %112 = vmatpush.msra.mxu1 %v89_v13 }
  0x1a   :  { %169 = vmatpush.msra.mxu3 %v89_v13 }
  0x1b   :  { %113 = vmatpush.msra.mxu1 %v88_v14 }
  0x1c   :  { %170 = vmatpush.msra.mxu3 %v88_v14 }
  0x1d   :  { %114 = vmatpush.msra.mxu1 %v87_v15 }
  0x1e   :  { %171 = vmatpush.msra.mxu3 %v87_v15 }
  0x1f   :  { %115 = vmatpush.msra.mxu1 %v86_v16 }
  0x20   :  { %172 = vmatpush.msra.mxu3 %v86_v16 }
  0x21   :  { %116 = vmatpush.msra.mxu1 %v85_v17 }
  0x22   :  { %173 = vmatpush.msra.mxu3 %v85_v17 }
  0x23   :  { %117 = vmatpush.msra.mxu1 %v84_v18 }
  0x24   :  { %174 = vmatpush.msra.mxu3 %v84_v18 }
  0x25   :  { %118 = vmatpush.msra.mxu1 %v83_v19 }
  0x26   :  { %175 = vmatpush.msra.mxu3 %v83_v19 }
  0x86   :  { %v75_v21 = vpop.f32.mrf.mxu0 }
  0x87   :  { %v76_v22 = vadd.f32 %v179_v20, %v75_v21 }
  0x89   :  { %v81_v23 = vmax.f32 %v76_v22, 0.0 }
  0x8b   :  { %119 = vmatmul.f32.vlgmr.msra.gmra.mxu1 %v81_v23 }
  0x8e   :  { %v78_v24 = vpop.f32.mrf.mxu0 }
  0x8f   :  { %v79_v25 = vadd.f32 %v179_v20, %v78_v24 }
  0x91   :  { %v82_v26 = vmax.f32 %v79_v25, 0.0 }
  0x93   :  { %122 = vmatmul.f32.vlgmr.msra.gmra.mxu3 %v82_v26 }
 0x108   :  { %v120_v28 = vpop.f32.mrf.mxu1 }
 0x109   :  { %v121_v31 = vadd.f32 %v180_v27, %v120_v28 }
 0x10b   :  { %v126_v33 = vmax.f32 %v121_v31, 0.0 }
 0x116   :  { %v123_v29 = vpop.f32.mrf.mxu3 }
 0x117   :  { %v124_v30 = vadd.f32 %v180_v27, %v123_v29 }
 0x119   :  { %v127_v32 = vmax.f32 %v124_v30, 0.0 }
 0x11b   :  { %145 = vmatpush.xpose.msra.mxu2 %v127_v32 }
 0x11f   :  { %146 = vmatpush.xpose.msra.mxu2 %v126_v33 }
 0x122   :  { %147 = vmatmul.f32.vlgmr.msra.gmra.mxu2 %v128_v34 }
 0x1a5   :  { %v148_v36 = vpop.f32.mrf.mxu2 }
 0x1a6   :  { %v149_v37 = vadd.f32 %v148_v36, %v130_v35 }
 0x1a8   :  { %152 = vst.msk [vmem:[%s289_s7] sm:$0x1] %vm151_vm1, %v149_v37 }
 0x1a9   :  { %157 = vsyncpa [#allocation4], 1 }

</bundles_post_ra>
